<compile_context>
chip_gen: v5e
topology: v5e:2x2
jax: 0.10.0
libtpu: 0.0.40
codegen_flags: <defaults>
</compile_context>

<pallas_src>
import functools
import math

import jax
import jax.numpy as jnp
import numpy as np
from jax.experimental import pallas as pl
from jax.experimental.pallas import tpu as pltpu


def _round_up(x, m):
    return ((x + m - 1) // m) * m


def _rfsq_kernel(const_ref, sel_ref, x_ref, qout_ref, idx_ref, *, num_q,
                 idx_offset, mm_dtype):
    # const_ref: (rows, LX) f32: shift, half_l, offset, 1/half_width,
    #            inv_scale[q] (q=0..Q-1), scale[q] (q=0..Q-1)   (lane-tiled per token)
    # sel_ref:   (Q*LX, LI) block-sparse basis-selection matrices (token-major cols)
    # x_ref:     (T, LX) f32 packed tokens (P tokens per row)
    # qout_ref:  (T, LX) f32 summed quantized output (packed layout)
    # idx_ref:   (T, LI) int32 per-quantizer indices, token-major & lane-dense
    x = x_ref[...]
    lx = x.shape[1]

    shift = const_ref[0:1, :]
    half_l = const_ref[1:2, :]
    offset = const_ref[2:3, :]
    inv_hw = const_ref[3:4, :]

    residual = x
    idx_acc = None
    for q in range(num_q):  # static unrolled loop over quantizers
        inv_scale = const_ref[4 + q:5 + q, :]              # (levels-1)**q
        scale = const_ref[4 + num_q + q:5 + num_q + q, :]  # (levels-1)**(-q)
        z = residual * inv_scale
        qr = jnp.round(jnp.tanh(z + shift) * half_l - offset)   # FSQ bound + round
        # per-token index: group-of-D lane reduction on the MXU, already token-major
        part = jnp.dot(qr.astype(mm_dtype),
                       sel_ref[q * lx:(q + 1) * lx, :],
                       preferred_element_type=jnp.float32)
        idx_acc = part if idx_acc is None else idx_acc + part
        residual = residual - (qr * inv_hw) * scale              # codes * scale

    qout_ref[...] = (x - residual).astype(qout_ref.dtype)        # == sum(quantized)
    idx_ref[...] = jnp.round(idx_acc + idx_offset).astype(jnp.int32)


def _make_constants(levels, num_quantizers, pack, eps=1e-3):
    """Host-side precompute of all FSQ constants (lane-tiled / token-major)."""
    lv = np.asarray(levels, dtype=np.float32)
    D = lv.shape[0]
    Q = num_quantizers
    half_l = ((lv - 1.0) * (1.0 + eps) / 2.0).astype(np.float32)
    offset = np.where(lv % 2.0 == 0.0, 0.5, 0.0).astype(np.float32)
    shift = np.arctanh(offset / half_l).astype(np.float32)
    half_width = np.floor(lv / 2.0).astype(np.float32)
    basis = np.cumprod(np.concatenate([[1.0], lv[:-1]])).astype(np.float32)

    # f32 MXU index reduction is exact only while indices stay below 2^24.
    assert float(np.prod(lv.astype(np.float64))) < 2.0 ** 24, (
        "codebook_size must be < 2^24 for exact f32 index reduction")

    LX = pack * D
    LI = pack * Q
    rows = _round_up(4 + 2 * Q, 8)
    tab = np.zeros((rows, LX), dtype=np.float32)
    tab[0] = np.tile(shift, pack)
    tab[1] = np.tile(half_l, pack)
    tab[2] = np.tile(offset, pack)
    tab[3] = np.tile((1.0 / half_width).astype(np.float32), pack)
    for q in range(Q):
        inv_scale = ((lv - 1.0) ** np.float32(q)).astype(np.float32)
        scale = ((lv - 1.0) ** np.float32(-q)).astype(np.float32)
        tab[4 + q] = np.tile(inv_scale, pack)
        tab[4 + Q + q] = np.tile(scale, pack)

    # Token-major basis-selection matrices (one per quantizer, flattened to 2D):
    # sel[q*LX + t*D + d, t*Q + q] = basis[d]
    sel = np.zeros((Q * LX, LI), dtype=np.float32)
    for q in range(Q):
        for t in range(pack):
            sel[q * LX + t * D:q * LX + (t + 1) * D, t * Q + q] = basis

    idx_offset = float(np.dot(half_width.astype(np.float64),
                              basis.astype(np.float64)))  # exact integer

    # bf16 matmul is exact iff basis entries & q_round magnitudes are bf16-exact
    # (products accumulate in f32 inside the MXU).
    bf16_exact = bool(
        np.all(np.asarray(basis, dtype=jnp.bfloat16).astype(np.float32) == basis)
        and float(np.max(half_width)) <= 256.0)
    sel_dtype = jnp.bfloat16 if bf16_exact else jnp.float32
    return jnp.asarray(tab), jnp.asarray(sel, dtype=sel_dtype), idx_offset


def residual_fsq_forward(x, levels, num_quantizers, tile_rows=1024):
    """x: (B, N, D) float32, D == len(levels). Returns (quantized_out, indices)."""
    B, N, D = x.shape
    assert D == len(levels), "dim must equal len(levels) (Identity projections)"
    Q = num_quantizers

    # Tokens per packed row: smallest P with P*D and P*Q both multiples of 128.
    p_x = 128 // math.gcd(128, D)
    p_i = 128 // math.gcd(128, Q)
    P = p_x * p_i // math.gcd(p_x, p_i)
    LX, LI = P * D, P * Q

    const_tab, sel, idx_offset = _make_constants(levels, Q, P)
    crows = const_tab.shape[0]

    M = B * N
    M_pad = _round_up(M, P)
    xf = x.reshape(M, D).astype(jnp.float32)
    padded = M_pad != M
    if padded:
        # TODO(synk): tail tokens (M % P != 0) force one pad + slice HBM pass;
        # the common M % P == 0 case below is copy-free.
        xf = jnp.pad(xf, ((0, M_pad - M), (0, 0)))
    R = M_pad // P
    xp = xf.reshape(R, LX)            # free, contiguous: lane-dense slab

    # Row-tile: full-extent block for tiny inputs; otherwise multiple of 8,
    # capped for VMEM and sized so the grid has >=2 steps (v7x has 2 TCs).
    if R <= 16:
        tile_R = R
    else:
        vmem_cap = max(8, ((2 << 20) // (LX * 4)) // 8 * 8)   # ~2 MiB x-block
        tile_R = min(tile_rows, vmem_cap, _round_up(pl.cdiv(R, 2), 8))
    grid = (pl.cdiv(R, tile_R),)      # partial last block handled by Pallas

    kernel = functools.partial(_rfsq_kernel, num_q=Q, idx_offset=idx_offset,
                               mm_dtype=sel.dtype)
    qout_p, idx_p = pl.pallas_call(
        kernel,
        out_shape=(
            jax.ShapeDtypeStruct((R, LX), jnp.float32),
            jax.ShapeDtypeStruct((R, LI), jnp.int32),
        ),
        grid_spec=pltpu.PrefetchScalarGridSpec(
            num_scalar_prefetch=0,
            grid=grid,
            in_specs=[
                pl.BlockSpec((crows, LX), lambda i: (0, 0)),   # constants (fetched once)
                pl.BlockSpec((Q * LX, LI), lambda i: (0, 0)),  # basis selection (fetched once)
                pl.BlockSpec((tile_R, LX), lambda i: (i, 0)),
            ],
            out_specs=[
                pl.BlockSpec((tile_R, LX), lambda i: (i, 0)),
                pl.BlockSpec((tile_R, LI), lambda i: (i, 0)),
            ],
        ),
        compiler_params=pltpu.CompilerParams(
            dimension_semantics=("parallel",),
            vmem_limit_bytes=48 * 1024 * 1024),
    )(const_tab, sel, xp)

    qout = qout_p.reshape(M_pad, D)   # free row-major reshapes (token-major layout)
    idx = idx_p.reshape(M_pad, Q)
    if padded:
        qout = qout[:M]
        idx = idx[:M]
    return qout.reshape(B, N, D), idx.reshape(B, N, Q)


def residual_fsq_reference(x, levels, num_quantizers, eps=1e-3):
    """Pure-JAX reference mirroring the PyTorch forward (eval, no dropout)."""
    lv = jnp.asarray(levels, dtype=jnp.float32)
    half_l = (lv - 1.0) * (1.0 + eps) / 2.0
    offset = jnp.where(lv % 2.0 == 0.0, 0.5, 0.0)
    shift = jnp.arctanh(offset / half_l)
    half_width = jnp.floor(lv / 2.0)
    basis = jnp.cumprod(jnp.concatenate([jnp.ones((1,)), lv[:-1]]))

    residual = x.astype(jnp.float32)
    qout = jnp.zeros_like(residual)
    all_idx = []
    for q in range(num_quantizers):
        scale = (lv - 1.0) ** (-float(q))
        z = residual / scale
        q_round = jnp.round(jnp.tanh(z + shift) * half_l - offset)
        codes = q_round / half_width
        all_idx.append(jnp.sum((q_round + half_width) * basis, axis=-1).astype(jnp.int32))
        quantized = codes * scale
        residual = residual - quantized
        qout = qout + quantized
    return qout, jnp.stack(all_idx, axis=-1)


if __name__ == "__main__":
    # Module config: levels=[8,5,5,5] -> codebook_dim=4, dim=None -> Identity
    # projections, num_quantizers=2, quantize_dropout=False (inference path).
    levels = [8, 5, 5, 5]
    num_quantizers = 2
    B, N = 2, 64
    D = len(levels)

    key = jax.random.PRNGKey(0)
    x = jax.random.normal(key, (B, N, D), dtype=jnp.float32)

    qout, idx = residual_fsq_forward(x, levels, num_quantizers)
    qout = jax.block_until_ready(qout)
    idx = jax.block_until_ready(idx)

    qout_ref, idx_ref = residual_fsq_reference(x, levels, num_quantizers)
    np.testing.assert_allclose(np.asarray(qout), np.asarray(qout_ref),
                               rtol=1e-5, atol=1e-5)
    np.testing.assert_array_equal(np.asarray(idx), np.asarray(idx_ref))

    # TODO(synk): quantize-dropout branch (training-only, host/distributed RNG
    # driven control flow) is outside the hot path and not implemented here.
    print("KERNEL_OK")
</pallas_src>

<mosaic_0001>
module attributes {stable_mosaic.version = 11 : i64} {
  func.func @_rfsq_kernel(%arg0: i32, %arg1: memref<8x256xf32, #tpu.memory_space<vmem>>, %arg2: memref<512x128xbf16, #tpu.memory_space<vmem>>, %arg3: memref<2x256xf32, #tpu.memory_space<vmem>>, %arg4: memref<2x256xf32, #tpu.memory_space<vmem>>, %arg5: memref<2x128xi32, #tpu.memory_space<vmem>>) attributes {dimension_semantics = [#tpu.dimension_semantics<parallel>], iteration_bounds = array<i64: 1>, scalar_prefetch = 0 : i64, scratch_operands = 0 : i64, tpu.core_type = #tpu.core_type<tc>, window_params = [{pipeline_mode = #tpu.pipeline_mode<synchronous>, transform_indices = @transform_0, window_bounds = array<i64: 8, 256>}, {pipeline_mode = #tpu.pipeline_mode<synchronous>, transform_indices = @transform_1, window_bounds = array<i64: 512, 128>}, {transform_indices = @transform_2, window_bounds = array<i64: 2, 256>}, {transform_indices = @transform_3, window_bounds = array<i64: 2, 256>}, {transform_indices = @transform_4, window_bounds = array<i64: 2, 128>}]} {
    %c0 = arith.constant 0 : index
    %c0_0 = arith.constant 0 : index
    %0 = vector.load %arg3[%c0, %c0_0] : memref<2x256xf32, #tpu.memory_space<vmem>>, vector<2x256xf32>
    %c0_1 = arith.constant 0 : index
    %c0_2 = arith.constant 0 : index
    %1 = vector.load %arg1[%c0_1, %c0_2] : memref<8x256xf32, #tpu.memory_space<vmem>>, vector<1x256xf32>
    %c1 = arith.constant 1 : index
    %c0_3 = arith.constant 0 : index
    %2 = vector.load %arg1[%c1, %c0_3] : memref<8x256xf32, #tpu.memory_space<vmem>>, vector<1x256xf32>
    %c2 = arith.constant 2 : index
    %c0_4 = arith.constant 0 : index
    %3 = vector.load %arg1[%c2, %c0_4] : memref<8x256xf32, #tpu.memory_space<vmem>>, vector<1x256xf32>
    %c3 = arith.constant 3 : index
    %c0_5 = arith.constant 0 : index
    %4 = vector.load %arg1[%c3, %c0_5] : memref<8x256xf32, #tpu.memory_space<vmem>>, vector<1x256xf32>
    %c4 = arith.constant 4 : index
    %c0_6 = arith.constant 0 : index
    %5 = vector.load %arg1[%c4, %c0_6] : memref<8x256xf32, #tpu.memory_space<vmem>>, vector<1x256xf32>
    %c6 = arith.constant 6 : index
    %c0_7 = arith.constant 0 : index
    %6 = vector.load %arg1[%c6, %c0_7] : memref<8x256xf32, #tpu.memory_space<vmem>>, vector<1x256xf32>
    %7 = vector.broadcast %5 : vector<1x256xf32> to vector<2x256xf32>
    %8 = arith.mulf %0, %7 : vector<2x256xf32>
    %9 = vector.broadcast %1 : vector<1x256xf32> to vector<2x256xf32>
    %10 = arith.addf %8, %9 : vector<2x256xf32>
    %11 = math.tanh %10 : vector<2x256xf32>
    %12 = vector.broadcast %2 : vector<1x256xf32> to vector<2x256xf32>
    %13 = arith.mulf %11, %12 : vector<2x256xf32>
    %14 = vector.broadcast %3 : vector<1x256xf32> to vector<2x256xf32>
    %15 = arith.subf %13, %14 : vector<2x256xf32>
    %16 = math.roundeven %15 : vector<2x256xf32>
    %17 = arith.truncf %16 : vector<2x256xf32> to vector<2x256xbf16>
    %c0_8 = arith.constant 0 : index
    %c0_9 = arith.constant 0 : index
    %18 = vector.load %arg2[%c0_8, %c0_9] : memref<512x128xbf16, #tpu.memory_space<vmem>>, vector<256x128xbf16>
    %cst = arith.constant dense<0.000000e+00> : vector<2x128xf32>
    %19 = tpu.matmul %17, %18, %cst {dimension_numbers = #tpu.dot_dimension_numbers<[1], [0], [0], [1], [0, 0, 1, 1], [], []>} : vector<2x256xbf16>, vector<256x128xbf16>, vector<2x128xf32> -> vector<2x128xf32>
    %20 = vector.broadcast %4 : vector<1x256xf32> to vector<2x256xf32>
    %21 = arith.mulf %16, %20 : vector<2x256xf32>
    %22 = vector.broadcast %6 : vector<1x256xf32> to vector<2x256xf32>
    %23 = arith.mulf %21, %22 : vector<2x256xf32>
    %24 = arith.subf %0, %23 : vector<2x256xf32>
    %c5 = arith.constant 5 : index
    %c0_10 = arith.constant 0 : index
    %25 = vector.load %arg1[%c5, %c0_10] : memref<8x256xf32, #tpu.memory_space<vmem>>, vector<1x256xf32>
    %c7 = arith.constant 7 : index
    %c0_11 = arith.constant 0 : index
    %26 = vector.load %arg1[%c7, %c0_11] : memref<8x256xf32, #tpu.memory_space<vmem>>, vector<1x256xf32>
    %27 = vector.broadcast %25 : vector<1x256xf32> to vector<2x256xf32>
    %28 = arith.mulf %24, %27 : vector<2x256xf32>
    %29 = vector.broadcast %1 : vector<1x256xf32> to vector<2x256xf32>
    %30 = arith.addf %28, %29 : vector<2x256xf32>
    %31 = math.tanh %30 : vector<2x256xf32>
    %32 = vector.broadcast %2 : vector<1x256xf32> to vector<2x256xf32>
    %33 = arith.mulf %31, %32 : vector<2x256xf32>
    %34 = vector.broadcast %3 : vector<1x256xf32> to vector<2x256xf32>
    %35 = arith.subf %33, %34 : vector<2x256xf32>
    %36 = math.roundeven %35 : vector<2x256xf32>
    %37 = arith.truncf %36 : vector<2x256xf32> to vector<2x256xbf16>
    %c256 = arith.constant 256 : index
    %c0_12 = arith.constant 0 : index
    %38 = vector.load %arg2[%c256, %c0_12] : memref<512x128xbf16, #tpu.memory_space<vmem>>, vector<256x128xbf16>
    %cst_13 = arith.constant dense<0.000000e+00> : vector<2x128xf32>
    %39 = tpu.matmul %37, %38, %cst_13 {dimension_numbers = #tpu.dot_dimension_numbers<[1], [0], [0], [1], [0, 0, 1, 1], [], []>} : vector<2x256xbf16>, vector<256x128xbf16>, vector<2x128xf32> -> vector<2x128xf32>
    %40 = arith.addf %19, %39 : vector<2x128xf32>
    %41 = vector.broadcast %4 : vector<1x256xf32> to vector<2x256xf32>
    %42 = arith.mulf %36, %41 : vector<2x256xf32>
    %43 = vector.broadcast %26 : vector<1x256xf32> to vector<2x256xf32>
    %44 = arith.mulf %42, %43 : vector<2x256xf32>
    %45 = arith.subf %24, %44 : vector<2x256xf32>
    %46 = arith.subf %0, %45 : vector<2x256xf32>
    %c0_14 = arith.constant 0 : index
    %c0_15 = arith.constant 0 : index
    %47 = vector.load %arg4[%c0_14, %c0_15] : memref<2x256xf32, #tpu.memory_space<vmem>>, vector<2x256xf32>
    tpu.vector_store %arg4[%c0_14, %c0_15], %46 {strides = array<i32>} : memref<2x256xf32, #tpu.memory_space<vmem>>, vector<2x256xf32>,
    %cst_16 = arith.constant 5.000000e+02 : f32
    %48 = vector.broadcast %cst_16 : f32 to vector<2x128xf32>
    %49 = arith.addf %40, %48 : vector<2x128xf32>
    %50 = math.roundeven %49 : vector<2x128xf32>
    %51 = arith.fptosi %50 : vector<2x128xf32> to vector<2x128xi32>
    %c0_17 = arith.constant 0 : index
    %c0_18 = arith.constant 0 : index
    %52 = vector.load %arg5[%c0_17, %c0_18] : memref<2x128xi32, #tpu.memory_space<vmem>>, vector<2x128xi32>
    tpu.vector_store %arg5[%c0_17, %c0_18], %51 {strides = array<i32>} : memref<2x128xi32, #tpu.memory_space<vmem>>, vector<2x128xi32>,
    return
  }
  func.func @transform_0(%arg0: i32) -> (i32, i32) {
    %c0_i32 = arith.constant 0 : i32
    %c0_i32_0 = arith.constant 0 : i32
    %c0_i32_1 = arith.constant 0 : i32
    return %c0_i32, %c0_i32_0 : i32, i32
  }
  func.func @transform_1(%arg0: i32) -> (i32, i32) {
    %c0_i32 = arith.constant 0 : i32
    %c0_i32_0 = arith.constant 0 : i32
    %c0_i32_1 = arith.constant 0 : i32
    return %c0_i32, %c0_i32_0 : i32, i32
  }
  func.func @transform_2(%arg0: i32) -> (i32, i32) {
    %c0_i32 = arith.constant 0 : i32
    %c0_i32_0 = arith.constant 0 : i32
    return %arg0, %c0_i32 : i32, i32
  }
  func.func @transform_3(%arg0: i32) -> (i32, i32) {
    %c0_i32 = arith.constant 0 : i32
    %c0_i32_0 = arith.constant 0 : i32
    return %arg0, %c0_i32 : i32, i32
  }
  func.func @transform_4(%arg0: i32) -> (i32, i32) {
    %c0_i32 = arith.constant 0 : i32
    %c0_i32_0 = arith.constant 0 : i32
    return %arg0, %c0_i32 : i32, i32
  }
}

</mosaic_0001>

<bundles_post_ra>
// kernel: tpu_custom_call.1
= control target key start
LH: loop header
LB: loop body
LE: loop exit
PB: predicated region body
PF: predicated region fallthrough
CT: control target
= control target key end

     0   :  { %10 = vsyncpa [#allocation3], 0  ;;  %s889_s0 = inlined_call_operand.hbm [shape: f32[8,256], index: 0, kind: input, shape index: {}]   ;;  %s890_s1 = inlined_call_operand.hbm [shape: bf16[512,128], index: 1, kind: input, shape index: {}]   ;;  %s891_s2 = inlined_call_operand.hbm [shape: f32[2,256], index: 2, kind: input, shape index: {}]   ;;  %s892_s3 = inlined_call_operand.hbm [shape: f32[2,256], index: 3, kind: output, shape index: {0}]   ;;  %s893_s4 = inlined_call_operand.hbm [shape: s32[2,128], index: 4, kind: output, shape index: {1}]  }
   0x1   :  { %11 = vsyncpa [#allocation6], 0 }
   0x2   :  { %12 = vsyncpa [#allocation4], 0  ;;  %s29_s17 = sshll.u32 %s890_s1, 4  ;;  %s30_s17 = int_to_ptr.hbm [resolvable:$true] %s29_s17 }
   0x3   :  { %13 = vsyncpa [#allocation10], 0  ;;  %s825_s18 = smov [#allocation5]   ;;  %s19_s22 = sshll.u32 %s889_s0, 4  ;;  %s20_s22 = int_to_ptr.hbm [resolvable:$true] %s19_s22 }
   0x4   :  { %s31_s19 = sshll.u32 %s825_s18, 4  ;;  %s826_s23 = smov 64   ;;  %s32_s19 = int_to_ptr.vmem [resolvable:$true] %s31_s19 }
   0x5   :  { %s827_s24 = smov 4   ;;  %s828_s25 = smov [#allocation2]  }
   0x6   :  { %37 = dma.hbm_to_vmem [thread:$0]  %s30_s17, 4096, %s32_s19, [#allocation6], %s826_s23, %s826_s23, %s827_s24  }
   0x7   :  { %s21_s26 = sshll.u32 %s828_s25, 4  ;;  %s43_s29 = sshll.u32 %s891_s2, 4  ;;  %s22_s26 = int_to_ptr.vmem [resolvable:$true] %s21_s26  ;;  %s44_s29 = int_to_ptr.hbm [resolvable:$true] %s43_s29 }
   0x8   :  { %24 = dma.hbm_to_vmem [thread:$0]  %s20_s22, 256, %s22_s26, [#allocation3]  }
   0x9   :  { %s829_s1 = smov [#allocation7]  }
   0xa   :  { %s45_s30 = sshll.u32 %s829_s1, 4  ;;  %s46_s30 = int_to_ptr.vmem [resolvable:$true] %s45_s30 }
   0xb   :  { %48 = dma.hbm_to_vmem [thread:$0]  %s44_s29, 64, %s46_s30, [#allocation6]  }
   0xc   :  { %817 = dma.done.wait [#allocation3], 256  }
   0xd   :  { %818 = vsyncadd [#allocation3], 4294967040 }
   0xe   :  { %819 = dma.done.wait [#allocation6], 4160  }
   0xf   :  { %820 = vsyncadd [#allocation6], 4294963136  ;;  %v642_v0 = vld [vmem:[#allocation5 + $0x38] sm:$0xff]  ;;  %v641_v2 = vld [vmem:[#allocation5 + $0x30] sm:$0xff]  ;;  %vm77_vm0 = vcmask 1041408   ;;  %s830_s0 = smov [#allocation8]  }
  0x10   :  { %v650_v1 = vld [vmem:[#allocation5 + $0x78] sm:$0xff]  ;;  %433 = vmatpush.bf16.msra.mxu2 %v642_v0  ;;  %v649_v3 = vld [vmem:[#allocation5 + $0x70] sm:$0xff]  ;;  %v640_v8 = vld [vmem:[#allocation5 + $0x28] sm:$0xff]  ;;  %s478_s2 = sshll.u32 %s830_s0, 4  ;;  %s480_s7 = sshll.u32 %s892_s3, 4  ;;  %s479_s2 = int_to_ptr.vmem [resolvable:$true] %s478_s2  ;;  %s481_s7 = int_to_ptr.hbm [resolvable:$true] %s480_s7 }
  0x11   :  { %446 = vmatpush.bf16.msra.mxu3 %v650_v1  ;;  %v658_v4 = vld [vmem:[#allocation5 + $0xb8] sm:$0xff]  ;;  %v657_v6 = vld [vmem:[#allocation5 + $0xb0] sm:$0xff]  ;;  %v648_v9 = vld [vmem:[#allocation5 + $0x68] sm:$0xff]  ;;  %s831_s8 = smov [#allocation9]   ;;  %s491_s11 = sshll.u32 %s893_s4, 4  ;;  %s492_s11 = int_to_ptr.hbm [resolvable:$true] %s491_s11 }
  0x12   :  { %v666_v5 = vld [vmem:[#allocation5 + $0xf8] sm:$0xff]  ;;  %311 = vmatpush.bf16.msra.mxu0 %v658_v4  ;;  %v665_v7 = vld [vmem:[#allocation5 + $0xf0] sm:$0xff]  ;;  %v656_v10 = vld [vmem:[#allocation5 + $0xa8] sm:$0xff]  ;;  %s489_s9 = sshll.u32 %s831_s8, 4  ;;  %s490_s9 = int_to_ptr.vmem [resolvable:$true] %s489_s9 }
  0x13   :  { %324 = vmatpush.bf16.msra.mxu1 %v666_v5  ;;  %v664_v11 = vld [vmem:[#allocation5 + $0xe8] sm:$0xff]  ;;  %v62_v12 = vld [vmem:[#allocation2] ss:$8 sm:$0x3]  ;;  %v639_v13 = vld [vmem:[#allocation5 + $0x20] sm:$0xff] }
  0x14   :  { %434 = vmatpush.bf16.msra.mxu2 %v641_v2  ;;  %v647_v14 = vld [vmem:[#allocation5 + $0x60] sm:$0xff]  ;;  %v70_v15 = vld [vmem:[#allocation2 + $0x4] ss:$8 sm:$0x3]  ;;  %v83_v16 = vperm.slane %v62_v12, 1  ;;  %v82_v21 = vperm.slane %v62_v12, 0 }
  0x15   :  { %447 = vmatpush.bf16.msra.mxu3 %v649_v3  ;;  %v655_v17 = vld [vmem:[#allocation5 + $0xa0] sm:$0xff]  ;;  %v74_v19 = vperm.slane %v70_v15, 0  ;;  %v75_v20 = vperm.slane %v70_v15, 1  ;;  %v638_v22 = vld [vmem:[#allocation5 + $0x18] sm:$0xff]  ;;  %v637_v35 = vld [vmem:[#allocation5 + $0x10] sm:$0xff] }
  0x16   :  { %312 = vmatpush.bf16.msra.mxu0 %v657_v6  ;;  %v663_v18 = vld [vmem:[#allocation5 + $0xe0] sm:$0xff]  ;;  %v646_v23 = vld [vmem:[#allocation5 + $0x58] sm:$0xff]  ;;  %v84_v24 = vrot.slane %v83_v16, 6  ;;  %v645_v36 = vld [vmem:[#allocation5 + $0x50] sm:$0xff] }
  0x17   :  { %325 = vmatpush.bf16.msra.mxu1 %v665_v7  ;;  %v866_v25 = vld [vmem:[#allocation7] sm:$0xf]  ;;  %v64_v26 = vld [vmem:[#allocation2 + $0x1] ss:$8 sm:$0x3]  ;;  %v76_v27 = vrot.slane %v75_v20, 6 }
  0x18   :  { %435 = vmatpush.bf16.msra.mxu2 %v640_v8  ;;  %v654_v28 = vld [vmem:[#allocation5 + $0x98] sm:$0xff]  ;;  %v870_v32 = vsel %vm77_vm0, %v82_v21, %v84_v24  ;;  %v91_v34 = vperm.slane %v64_v26, 1  ;;  %v653_v39 = vld [vmem:[#allocation5 + $0x90] sm:$0xff]  ;;  %v90_v41 = vperm.slane %v64_v26, 0  ;;  %v636_v43 = vld [vmem:[#allocation5 + $0x8] sm:$0xff] }
  0x19   :  { %448 = vmatpush.bf16.msra.mxu3 %v648_v9  ;;  %v662_v29 = vld [vmem:[#allocation5 + $0xd8] sm:$0xff]  ;;  %v78_v31 = vsel %vm77_vm0, %v74_v19, %v76_v27  ;;  %v661_v40 = vld [vmem:[#allocation5 + $0xd0] sm:$0xff]  ;;  %v644_v44 = vld [vmem:[#allocation5 + $0x48] sm:$0xff] }
  0x1a   :  { %313 = vmatpush.bf16.msra.mxu0 %v656_v10  ;;  %v66_v30 = vld [vmem:[#allocation2 + $0x2] ss:$8 sm:$0x3]  ;;  %v80_v33 = vmul.f32 %v78_v31, %v866_v25  ;;  %v92_v42 = vrot.slane %v91_v34, 6  ;;  %v635_v48 = vld [vmem:[#allocation5] sm:$0xff]  ;;  %v652_v7 = vld [vmem:[#allocation5 + $0x88] sm:$0xff] }
  0x1b   :  { %326 = vmatpush.bf16.msra.mxu1 %v664_v11  ;;  %v98_v38 = vperm.slane %v66_v30, 1  ;;  %v97_v45 = vperm.slane %v66_v30, 0  ;;  %v643_v49 = vld [vmem:[#allocation5 + $0x40] sm:$0xff]  ;;  %v68_v51 = vld [vmem:[#allocation2 + $0x3] ss:$8 sm:$0x3] }
  0x1c   :  { %436 = vmatpush.bf16.msra.mxu2 %v639_v13  ;;  %v87_v37 = vadd.f32 %v870_v32, %v80_v33  ;;  %v93_v47 = vsel %vm77_vm0, %v90_v41, %v92_v42  ;;  %v72_v54 = vld [vmem:[#allocation2 + $0x6] ss:$8 sm:$0x3]  ;;  %v146_v56 = vperm.slane %v68_v51, 1  ;;  %v145_v63 = vperm.slane %v68_v51, 0  ;;  %v660_v8 = vld [vmem:[#allocation5 + $0xc8] sm:$0xff] }
  0x1d   :  { %449 = vmatpush.bf16.msra.mxu3 %v647_v14  ;;  %v99_v46 = vrot.slane %v98_v38, 6  ;;  %v153_v58 = vperm.slane %v72_v54, 1  ;;  %v160_v60 = vld [vmem:[#allocation2 + $0x5] ss:$8 sm:$0x3]  ;;  %v152_v2 = vperm.slane %v72_v54, 0 }
  0x1e   :  { %314 = vmatpush.bf16.msra.mxu0 %v655_v17  ;;  %693 = vtanh.f32 %v87_v37  ;;  %v147_v0 = vrot.slane %v146_v56, 6  ;;  %v165_v4 = vperm.slane %v160_v60, 1  ;;  %v164_v11 = vperm.slane %v160_v60, 0  ;;  %v651_v14 = vld [vmem:[#allocation5 + $0x80] sm:$0xff] }
  0x1f   :  { %327 = vmatpush.bf16.msra.mxu1 %v663_v18  ;;  %v100_v52 = vsel %vm77_vm0, %v97_v45, %v99_v46  ;;  %v154_v3 = vrot.slane %v153_v58, 6  ;;  %v659_v15 = vld [vmem:[#allocation5 + $0xc0] sm:$0xff] }
  0x20   :  { %437 = vmatpush.bf16.msra.mxu2 %v638_v22  ;;  %v148_v6 = vsel %vm77_vm0, %v145_v63, %v147_v0  ;;  %v166_v12 = vrot.slane %v165_v4, 6 }
  0x21   :  { %450 = vmatpush.bf16.msra.mxu3 %v646_v23  ;;  %v155_v10 = vsel %vm77_vm0, %v152_v2, %v154_v3 }
  0x22   :  { %315 = vmatpush.bf16.msra.mxu0 %v654_v28  ;;  %v167_v17 = vsel %vm77_vm0, %v164_v11, %v166_v12 }
  0x23   :  { %328 = vmatpush.bf16.msra.mxu1 %v662_v29 }
  0x24   :  { %438 = vmatpush.bf16.msra.mxu2 %v637_v35  ;;  %v694_v50 = vpop.eup %693 }
  0x25   :  { %451 = vmatpush.bf16.msra.mxu3 %v645_v36  ;;  %v95_v53 = vmul.f32 %v694_v50, %v93_v47 }
  0x26   :  { %316 = vmatpush.bf16.msra.mxu0 %v653_v39 }
  0x27   :  { %329 = vmatpush.bf16.msra.mxu1 %v661_v40  ;;  %v102_v55 = vsub.f32 %v95_v53, %v100_v52 }
  0x28   :  { %439 = vmatpush.bf16.msra.mxu2 %v636_v43 }
  0x29   :  { %452 = vmatpush.bf16.msra.mxu3 %v644_v44  ;;  %v669_v57 = vcvt.f32.s32 %v102_v55  ;;  %v667_v59 = vand.u32 2147483647, %v102_v55  ;;  %v672_v62 = vand.u32 2147483648, %v102_v55 }
  0x2a   :  { %317 = vmatpush.bf16.msra.mxu0 %v652_v7 }
  0x2b   :  { %v670_v61 = vcvt.s32.f32 %v669_v57  ;;  %vm668_vm1 = vcmp.lt.f32.partialorder %v667_v59, 8388608.0  ;;  %330 = vmatpush.bf16.msra.mxu1 %v660_v8 }
  0x2c   :  { %440 = vmatpush.bf16.msra.mxu2 %v635_v48 }
  0x2d   :  { %453 = vmatpush.bf16.msra.mxu3 %v643_v49  ;;  %v671_v1 = vand.u32 2147483647, %v670_v61 }
  0x2e   :  { %318 = vmatpush.bf16.msra.mxu0 %v651_v14 }
  0x2f   :  { %v673_v5 = vor.u32 %v672_v62, %v671_v1  ;;  %331 = vmatpush.bf16.msra.mxu1 %v659_v15 }
  0x31   :  { %v674_v9 = vsel %vm668_vm1, %v673_v5, %v102_v55 }
  0x32   :  { %105 = vst [vmem:[#allocation1] ss:$4 sm:$0xff] %v674_v9  ;;  %v150_v13 = vmul.f32 %v674_v9, %v148_v6 }
  0x34   :  { %v157_v16 = vmul.f32 %v155_v10, %v150_v13 }
  0x36   :  { %v158_v18 = vsub.f32 %v866_v25, %v157_v16 }
  0x38   :  { %v169_v19 = vmul.f32 %v167_v17, %v158_v18 }
  0x39   :  { %v106_v20 = vld.sshfl [vmem:[#allocation1] sm:$0xff pattern:$0x73625140]  ;;  %v107_v21 = vld.sshfl [vmem:[#allocation1 + $0x8] sm:$0xff pattern:$0x73625140] }
  0x3a   :  { %v110_v22 = vpack.c.bf16 %v106_v20, %v106_v20  ;;  %v111_v23 = vpack.c.bf16 %v107_v21, %v107_v21  ;;  %v170_v24 = vadd.f32 %v169_v19, %v870_v32  ;;  %v162_v32 = vld [vmem:[#allocation2 + $0x7] ss:$8 sm:$0x3] }
  0x3b   :  { %v462_v41 = vperm.slane %v162_v32, 1  ;;  %v461_v42 = vperm.slane %v162_v32, 0 }
  0x3c   :  { %441 = vmatmul.bf16.vlgmr.msra.gmra.mxu2 %v110_v22  ;;  %695 = vtanh.f32 %v170_v24  ;;  %454 = vmatmul.bf16.vlgmr.msra.gmra.mxu3 %v111_v23 }
  0x3d   :  { %v463_v43 = vrot.slane %v462_v41, 6 }
  0x3f   :  { %v464_v45 = vsel %vm77_vm0, %v461_v42, %v463_v43 }
  0x42   :  { %v696_v26 = vpop.eup %695 }
  0x43   :  { %v172_v27 = vmul.f32 %v696_v26, %v93_v47 }
  0x45   :  { %v173_v28 = vsub.f32 %v172_v27, %v100_v52 }
  0x47   :  { %v677_v29 = vcvt.f32.s32 %v173_v28  ;;  %v675_v30 = vand.u32 2147483647, %v173_v28  ;;  %v680_v33 = vand.u32 2147483648, %v173_v28 }
  0x49   :  { %v678_v31 = vcvt.s32.f32 %v677_v29  ;;  %vm676_vm2 = vcmp.lt.f32.partialorder %v675_v30, 8388608.0 }
  0x4b   :  { %v679_v34 = vand.u32 2147483647, %v678_v31 }
  0x4d   :  { %v681_v35 = vor.u32 %v680_v33, %v679_v34 }
  0x4f   :  { %v682_v36 = vsel %vm676_vm2, %v681_v35, %v173_v28 }
  0x50   :  { %176 = vst [vmem:[#allocation1] ss:$4 sm:$0xff] %v682_v36  ;;  %v459_v44 = vmul.f32 %v682_v36, %v148_v6 }
  0x52   :  { %v466_v46 = vmul.f32 %v464_v45, %v459_v44 }
  0x54   :  { %v467_v47 = vsub.f32 %v158_v18, %v466_v46 }
  0x56   :  { %v468_v50 = vsub.f32 %v866_v25, %v467_v47 }
  0x57   :  { %v177_v37 = vld.sshfl [vmem:[#allocation1] sm:$0xff pattern:$0x73625140]  ;;  %v178_v38 = vld.sshfl [vmem:[#allocation1 + $0x8] sm:$0xff pattern:$0x73625140] }
  0x58   :  { %v181_v39 = vpack.c.bf16 %v177_v37, %v177_v37  ;;  %v182_v40 = vpack.c.bf16 %v178_v38, %v178_v38  ;;  %469 = vst [vmem:[#allocation8] sm:$0xf] %v468_v50 }
  0x59   :  { %483 = dma.vmem_to_hbm [thread:$0]  %s479_s2, 64, %s481_s7, [#allocation4]  }
  0x5a   :  { %319 = vmatmul.bf16.vlgmr.msra.gmra.mxu0 %v181_v39  ;;  %332 = vmatmul.bf16.vlgmr.msra.gmra.mxu1 %v182_v40 }
  0xbf   :  { %v442_v48 = vpop.f32.mrf.mxu2  ;;  %v455_v49 = vpop.f32.mrf.mxu3 }
  0xc7   :  { %v444_v51 = vpop.f32.mrf.mxu2  ;;  %v457_v52 = vpop.f32.mrf.mxu3 }
  0xd7   :  { %v320_v53 = vpop.f32.mrf.mxu0  ;;  %v333_v54 = vpop.f32.mrf.mxu1 }
  0xd8   :  { %v334_v55 = vadd.f32 %v333_v54, %v320_v53 }
  0xda   :  { %v443_v56 = vadd.f32 %v442_v48, %v334_v55 }
  0xdc   :  { %v456_v57 = vadd.f32 %v455_v49, %v443_v56 }
  0xde   :  { %v470_v58 = vadd.f32 500.0, %v456_v57 }
  0xdf   :  { %v322_v59 = vpop.f32.mrf.mxu0  ;;  %v335_v25 = vpop.f32.mrf.mxu1 }
  0xe0   :  { %v685_v60 = vcvt.f32.s32 %v470_v58 }
  0xe2   :  { %472 = vst [vmem:[#allocation9] sm:$0x3] %v685_v60 }
  0xe3   :  { %494 = dma.vmem_to_hbm [thread:$0]  %s490_s9, 32, %s492_s11, [#allocation10]  }
  0xe4   :  { %821 = dma.done.wait [#allocation4], 64  }
  0xe5   :  { %822 = vsyncadd [#allocation4], 4294967232 }
  0xe6   :  { %823 = dma.done.wait [#allocation10], 32  }
  0xe7   :  { %824 = vsyncadd [#allocation10], 4294967264 }
  0xe8   :  { %503 = vsyncpa [#allocation3], 1 }
  0xe9   :  { %504 = vsyncpa [#allocation6], 1 }
  0xea   :  { %505 = vsyncpa [#allocation4], 1 }
  0xeb   :  { %506 = vsyncpa [#allocation10], 1 }

</bundles_post_ra>
